<compile_context>
chip_gen: v6e
topology: v6e:2x2x1
jax: 0.10.0
libtpu: 0.0.40
codegen_flags: <defaults>
</compile_context>

<pallas_src>
import functools

import jax
import jax.numpy as jnp
from jax.experimental import pallas as pl
from jax.experimental.pallas import tpu as pltpu


def _round_up(v, m):
    return ((v + m - 1) // m) * m


def gin_kernel(x_self_ref, adj_ref, x_nbr_ref, mask_ref, eps_ref,
               w1_ref, b1_ref, w2_ref, b2_ref, o_ref, acc_ref,
               *, compute_dtype):
    """Grid = (batch tiles, node-row tiles, neighbour/K tiles); K is last."""
    k = pl.program_id(2)

    @pl.when(k == 0)
    def _init():
        # GIN epsilon self-term (add_loop=True), added exactly once per row tile.
        acc_ref[...] = (1.0 + eps_ref[0]) * x_self_ref[...]

    # Dense neighbourhood aggregation on the MXU; f32 accumulation in VMEM scratch.
    adj_t = adj_ref[...].astype(compute_dtype)     # stored bf16 in HBM (0/1 exact)
    x_t = x_nbr_ref[...].astype(compute_dtype)
    acc_ref[...] += jnp.einsum("bij,bjd->bid", adj_t, x_t,
                               preferred_element_type=jnp.float32)

    @pl.when(k == pl.num_programs(2) - 1)
    def _finalize():
        TB, tn, D = acc_ref.shape
        # tn is a multiple of 8 by construction -> this flatten is a free
        # relabeling (no (8,128)-tile crossing, no VMEM copy).
        h = acc_ref[...].reshape(TB * tn, D)
        z = jnp.dot(h.astype(compute_dtype), w1_ref[...].astype(compute_dtype),
                    preferred_element_type=jnp.float32) + b1_ref[...]
        z = jnp.maximum(z, 0.0)                                     # ReLU (VPU)
        y = jnp.dot(z.astype(compute_dtype), w2_ref[...].astype(compute_dtype),
                    preferred_element_type=jnp.float32) + b2_ref[...]
        y = y.reshape(TB, tn, -1)
        # Optional node mask ((TB, tn, 1); all-ones when unused).
        o_ref[...] = (y * mask_ref[...]).astype(o_ref.dtype)


def dense_gin_forward(x, adj, mask, eps, params, *,
                      compute_dtype=jnp.bfloat16, batch_block=None):
    """Fused Dense GIN forward.

    x: (B, N, D) f32, adj: (B, N, N) (0/1), mask: (B, N) or None, eps: scalar.
    params: {"w1": (D,H), "b1": (1,H), "w2": (H,Dout), "b2": (1,Dout)} f32.
    compute_dtype: bf16 (default, ~3x MXU throughput, ~1e-2 accuracy) or f32
                   (strict 1e-5 numerics).
    """
    B, N, D = x.shape
    H = params["w1"].shape[1]
    Dout = params["w2"].shape[1]

    if mask is None:
        mask = jnp.ones((B, N), dtype=x.dtype)

    # --- node-dim padding & row/K tile selection ----------------------------
    n8 = _round_up(N, 8)
    if n8 <= 512:
        tn = tk = n_pad = n8            # small graphs: single K step, full rows
    else:
        tn, tk = 256, 512               # bounds adj tile to O(tn*tk); tk % 128 == 0
        n_pad = _round_up(N, 512)

    if n_pad != N:
        p = n_pad - N
        x = jnp.pad(x, ((0, 0), (0, p), (0, 0)))
        adj = jnp.pad(adj, ((0, 0), (0, p), (0, p)))
        mask = jnp.pad(mask, ((0, 0), (0, p)))

    # adj stored narrow in HBM: 0/1 entries are exact in bf16; halves the
    # dominant O(B*N^2) DMA stream.
    adj = adj.astype(jnp.bfloat16)
    mask3 = mask.astype(jnp.float32).reshape(B, n_pad, 1)
    eps_arr = jnp.asarray(eps, dtype=jnp.float32).reshape(1)

    # --- batch tile: fill the MXU / amortize per-step overhead ---------------
    # Rough per-batch-row footprint of one grid step (double-buffered input /
    # output tiles + accumulator + MLP intermediate), used to cap TB.
    per_b = (2 * (tn * tk * 2 + (tn + tk) * D * 4 + tn * 4 + tn * Dout * 4)
             + tn * D * 4 + tn * max(H, Dout) * 4)
    if batch_block is None:
        budget = 40 * 1024 * 1024
        tb = min(B, max(1, -(-256 // tn)))        # target >= 256 MLP rows / step
        if B >= 2:
            tb = min(tb, max(1, B // 2))          # keep >=2 batch steps (v7x: 2 TCs)
        tb = max(1, min(tb, max(1, budget // max(per_b, 1))))
        while B % tb != 0:
            tb -= 1
    else:
        tb = batch_block
        assert B % tb == 0, "batch_block must divide the batch size"
    TB = tb

    # --- explicit scoped-VMEM limit with headroom ----------------------------
    weights_bytes = 2 * 4 * (D * H + H + H * Dout + Dout)
    vmem_limit = int(min(max(2 * (TB * per_b + weights_bytes), 32 * 1024 * 1024),
                         48 * 1024 * 1024))

    kernel = functools.partial(gin_kernel, compute_dtype=compute_dtype)

    out = pl.pallas_call(
        kernel,
        out_shape=jax.ShapeDtypeStruct((B, n_pad, Dout), jnp.float32),
        grid_spec=pltpu.PrefetchScalarGridSpec(
            num_scalar_prefetch=0,
            grid=(B // TB, n_pad // tn, n_pad // tk),
            in_specs=[
                pl.BlockSpec((TB, tn, D), lambda b, i, k: (b, i, 0)),    # x rows (self term)
                pl.BlockSpec((TB, tn, tk), lambda b, i, k: (b, i, k)),   # adj tile (bf16)
                pl.BlockSpec((TB, tk, D), lambda b, i, k: (b, k, 0)),    # x neighbour cols
                pl.BlockSpec((TB, tn, 1), lambda b, i, k: (b, i, 0)),    # mask
                pl.BlockSpec(memory_space=pltpu.MemorySpace.SMEM),       # eps scalar
                # TODO(synk): mark the weight specs pipeline_mode=pl.Buffered(1)
                # (constant index_map) once D/H grow enough for weight VMEM to matter.
                pl.BlockSpec((D, H), lambda b, i, k: (0, 0)),            # w1
                pl.BlockSpec((1, H), lambda b, i, k: (0, 0)),            # b1
                pl.BlockSpec((H, Dout), lambda b, i, k: (0, 0)),         # w2
                pl.BlockSpec((1, Dout), lambda b, i, k: (0, 0)),         # b2
            ],
            out_specs=pl.BlockSpec((TB, tn, Dout), lambda b, i, k: (b, i, 0)),
            scratch_shapes=[pltpu.VMEM((TB, tn, D), jnp.float32)],       # f32 accumulator
        ),
        compiler_params=pltpu.CompilerParams(
            dimension_semantics=("parallel", "parallel", "arbitrary"),
            vmem_limit_bytes=vmem_limit),
    )(x, adj, x, mask3, eps_arr,
      params["w1"], params["b1"], params["w2"], params["b2"])

    return out[:, :N, :]


def init_params(key, d_in, hidden, d_out):
    """Deterministic synthetic init (PyTorch-Linear-like uniform ranges)."""
    ks = jax.random.split(key, 4)

    def lin(kw, kb, fan_in, fan_out):
        bound = 1.0 / jnp.sqrt(fan_in)
        w = jax.random.uniform(kw, (fan_in, fan_out), jnp.float32, -bound, bound)
        b = jax.random.uniform(kb, (1, fan_out), jnp.float32, -bound, bound)
        return w, b

    w1, b1 = lin(ks[0], ks[1], d_in, hidden)
    w2, b2 = lin(ks[2], ks[3], hidden, d_out)
    return {"w1": w1, "b1": b1, "w2": w2, "b2": b2}


def gin_reference(x, adj, mask, eps, p):
    """Plain-JAX reference matching the PyTorch Dense_GIN_layer forward."""
    out = jnp.einsum("bij,bjd->bid", adj, x)
    out = (1.0 + eps) * x + out
    out = jnp.maximum(out @ p["w1"] + p["b1"], 0.0)
    out = out @ p["w2"] + p["b2"]
    return out * mask[..., None]


if __name__ == "__main__":
    key = jax.random.PRNGKey(0)
    kx, ka, kp = jax.random.split(key, 3)

    B, N, D, H = 2, 8, 32, 64
    eps = 0.1

    x = jax.random.normal(kx, (B, N, D), dtype=jnp.float32)
    adj = (jax.random.uniform(ka, (B, N, N)) > 0.5).astype(jnp.float32)
    mask = jnp.array([[1.0] * N,
                      [1.0] * (N - 2) + [0.0] * 2], dtype=jnp.float32)

    params = init_params(kp, D, H, D)
    ref = gin_reference(x, adj, mask, eps, params)

    # Strict numeric path: f32 compute (adj stored bf16 is exact for 0/1 entries).
    out_f32 = dense_gin_forward(x, adj, mask, eps, params,
                                compute_dtype=jnp.float32)
    out_f32 = jax.block_until_ready(out_f32)
    assert out_f32.shape == (B, N, D)
    assert jnp.allclose(out_f32, ref, atol=1e-5, rtol=1e-5), (
        f"f32 path max abs err {jnp.max(jnp.abs(out_f32 - ref))}")

    # Fast default path: bf16 matmul inputs, f32 accumulation.
    out_bf = dense_gin_forward(x, adj, mask, eps, params)
    out_bf = jax.block_until_ready(out_bf)
    assert out_bf.shape == (B, N, D)
    assert jnp.allclose(out_bf, ref, atol=1e-1, rtol=5e-2), (
        f"bf16 path max abs err {jnp.max(jnp.abs(out_bf - ref))}")

    print("KERNEL_OK")
</pallas_src>

<mosaic_0001>
module attributes {stable_mosaic.version = 11 : i64} {
  func.func @gin_kernel(%arg0: i32, %arg1: i32, %arg2: i32, %arg3: memref<1x8x32xf32, #tpu.memory_space<vmem>>, %arg4: memref<1x8x8xbf16, #tpu.memory_space<vmem>>, %arg5: memref<1x8x32xf32, #tpu.memory_space<vmem>>, %arg6: memref<1x8x1xf32, #tpu.memory_space<vmem>>, %arg7: memref<1xf32, #tpu.memory_space<smem>>, %arg8: memref<32x64xf32, #tpu.memory_space<vmem>>, %arg9: memref<1x64xf32, #tpu.memory_space<vmem>>, %arg10: memref<64x32xf32, #tpu.memory_space<vmem>>, %arg11: memref<1x32xf32, #tpu.memory_space<vmem>>, %arg12: memref<1x8x32xf32, #tpu.memory_space<vmem>>, %arg13: memref<1x8x32xf32, #tpu.memory_space<vmem>>) attributes {dimension_semantics = [#tpu.dimension_semantics<parallel>, #tpu.dimension_semantics<parallel>, #tpu.dimension_semantics<arbitrary>], iteration_bounds = array<i64: 2, 1, 1>, scalar_prefetch = 0 : i64, scratch_operands = 1 : i64, tpu.core_type = #tpu.core_type<tc>, window_params = [{transform_indices = @transform_0, window_bounds = array<i64: 1, 8, 32>}, {transform_indices = @transform_1, window_bounds = array<i64: 1, 8, 8>}, {transform_indices = @transform_2, window_bounds = array<i64: 1, 8, 32>}, {transform_indices = @transform_3, window_bounds = array<i64: 1, 8, 1>}, {transform_indices = @transform_4, window_bounds = array<i64: 1>}, {pipeline_mode = #tpu.pipeline_mode<synchronous>, transform_indices = @transform_5, window_bounds = array<i64: 32, 64>}, {pipeline_mode = #tpu.pipeline_mode<synchronous>, transform_indices = @transform_6, window_bounds = array<i64: 1, 64>}, {pipeline_mode = #tpu.pipeline_mode<synchronous>, transform_indices = @transform_7, window_bounds = array<i64: 64, 32>}, {pipeline_mode = #tpu.pipeline_mode<synchronous>, transform_indices = @transform_8, window_bounds = array<i64: 1, 32>}, {transform_indices = @transform_9, window_bounds = array<i64: 1, 8, 32>}]} {
    %c0_i32 = arith.constant 0 : i32
    %0 = arith.cmpi eq, %arg2, %c0_i32 : i32
    %1 = arith.extui %0 : i1 to i32
    %c0_i32_0 = arith.constant 0 : i32
    %2 = arith.cmpi ne, %1, %c0_i32_0 : i32
    scf.if %2 {
      %c0_14 = arith.constant 0 : index
      %13 = memref.load %arg7[%c0_14] : memref<1xf32, #tpu.memory_space<smem>>
      %cst_15 = arith.constant 1.000000e+00 : f32
      %14 = arith.addf %cst_15, %13 : f32
      %c0_16 = arith.constant 0 : index
      %c0_17 = arith.constant 0 : index
      %c0_18 = arith.constant 0 : index
      %15 = vector.load %arg3[%c0_16, %c0_17, %c0_18] : memref<1x8x32xf32, #tpu.memory_space<vmem>>, vector<1x8x32xf32>
      %16 = vector.broadcast %14 : f32 to vector<1x8x32xf32>
      %17 = arith.mulf %16, %15 : vector<1x8x32xf32>
      %c0_19 = arith.constant 0 : index
      %c0_20 = arith.constant 0 : index
      %c0_21 = arith.constant 0 : index
      %18 = vector.load %arg13[%c0_19, %c0_20, %c0_21] : memref<1x8x32xf32, #tpu.memory_space<vmem>>, vector<1x8x32xf32>
      tpu.vector_store %arg13[%c0_19, %c0_20, %c0_21], %17 {strides = array<i32>} : memref<1x8x32xf32, #tpu.memory_space<vmem>>, vector<1x8x32xf32>,
    } else {
    }
    %c0 = arith.constant 0 : index
    %c0_1 = arith.constant 0 : index
    %c0_2 = arith.constant 0 : index
    %3 = vector.load %arg4[%c0, %c0_1, %c0_2] : memref<1x8x8xbf16, #tpu.memory_space<vmem>>, vector<1x8x8xbf16>
    %4 = arith.extf %3 : vector<1x8x8xbf16> to vector<1x8x8xf32>
    %c0_3 = arith.constant 0 : index
    %c0_4 = arith.constant 0 : index
    %c0_5 = arith.constant 0 : index
    %5 = vector.load %arg5[%c0_3, %c0_4, %c0_5] : memref<1x8x32xf32, #tpu.memory_space<vmem>>, vector<1x8x32xf32>
    %c0_6 = arith.constant 0 : index
    %c0_7 = arith.constant 0 : index
    %c0_8 = arith.constant 0 : index
    %6 = vector.load %arg13[%c0_6, %c0_7, %c0_8] : memref<1x8x32xf32, #tpu.memory_space<vmem>>, vector<1x8x32xf32>
    "tpu.trace_start"() <{level = 10 : i32, message = "bij,bjd->bid"}> : () -> ()
    %cst = arith.constant dense<0.000000e+00> : vector<1x8x32xf32>
    %7 = tpu.matmul %4, %5, %cst {dimension_numbers = #tpu.dot_dimension_numbers<[2], [1], [1], [2], [0, 0, 0, 1, 1, 2], [0], [0]>} : vector<1x8x8xf32>, vector<1x8x32xf32>, vector<1x8x32xf32> -> vector<1x8x32xf32>
    "tpu.trace_stop"() : () -> ()
    %8 = arith.addf %6, %7 : vector<1x8x32xf32>
    %c0_9 = arith.constant 0 : index
    %c0_10 = arith.constant 0 : index
    %c0_11 = arith.constant 0 : index
    %9 = vector.load %arg13[%c0_9, %c0_10, %c0_11] : memref<1x8x32xf32, #tpu.memory_space<vmem>>, vector<1x8x32xf32>
    tpu.vector_store %arg13[%c0_9, %c0_10, %c0_11], %8 {strides = array<i32>} : memref<1x8x32xf32, #tpu.memory_space<vmem>>, vector<1x8x32xf32>,
    %c0_i32_12 = arith.constant 0 : i32
    %10 = arith.cmpi eq, %arg2, %c0_i32_12 : i32
    %11 = arith.extui %10 : i1 to i32
    %c0_i32_13 = arith.constant 0 : i32
    %12 = arith.cmpi ne, %11, %c0_i32_13 : i32
    scf.if %12 {
      %c0_14 = arith.constant 0 : index
      %c0_15 = arith.constant 0 : index
      %c0_16 = arith.constant 0 : index
      %13 = vector.load %arg13[%c0_14, %c0_15, %c0_16] : memref<1x8x32xf32, #tpu.memory_space<vmem>>, vector<1x8x32xf32>
      %14 = vector.shape_cast %13 : vector<1x8x32xf32> to vector<8x32xf32>
      %c0_17 = arith.constant 0 : index
      %c0_18 = arith.constant 0 : index
      %15 = vector.load %arg8[%c0_17, %c0_18] : memref<32x64xf32, #tpu.memory_space<vmem>>, vector<32x64xf32>
      %cst_19 = arith.constant dense<0.000000e+00> : vector<8x64xf32>
      %16 = tpu.matmul %14, %15, %cst_19 {dimension_numbers = #tpu.dot_dimension_numbers<[1], [0], [0], [1], [0, 0, 1, 1], [], []>} : vector<8x32xf32>, vector<32x64xf32>, vector<8x64xf32> -> vector<8x64xf32>
      %c0_20 = arith.constant 0 : index
      %c0_21 = arith.constant 0 : index
      %17 = vector.load %arg9[%c0_20, %c0_21] : memref<1x64xf32, #tpu.memory_space<vmem>>, vector<1x64xf32>
      %18 = vector.broadcast %17 : vector<1x64xf32> to vector<8x64xf32>
      %19 = arith.addf %16, %18 : vector<8x64xf32>
      %cst_22 = arith.constant 0.000000e+00 : f32
      %20 = vector.broadcast %cst_22 : f32 to vector<8x64xf32>
      %21 = arith.maximumf %19, %20 : vector<8x64xf32>
      %c0_23 = arith.constant 0 : index
      %c0_24 = arith.constant 0 : index
      %22 = vector.load %arg10[%c0_23, %c0_24] : memref<64x32xf32, #tpu.memory_space<vmem>>, vector<64x32xf32>
      %cst_25 = arith.constant dense<0.000000e+00> : vector<8x32xf32>
      %23 = tpu.matmul %21, %22, %cst_25 {dimension_numbers = #tpu.dot_dimension_numbers<[1], [0], [0], [1], [0, 0, 1, 1], [], []>} : vector<8x64xf32>, vector<64x32xf32>, vector<8x32xf32> -> vector<8x32xf32>
      %c0_26 = arith.constant 0 : index
      %c0_27 = arith.constant 0 : index
      %24 = vector.load %arg11[%c0_26, %c0_27] : memref<1x32xf32, #tpu.memory_space<vmem>>, vector<1x32xf32>
      %25 = vector.broadcast %24 : vector<1x32xf32> to vector<8x32xf32>
      %26 = arith.addf %23, %25 : vector<8x32xf32>
      %27 = vector.shape_cast %26 : vector<8x32xf32> to vector<1x8x32xf32>
      %c0_28 = arith.constant 0 : index
      %c0_29 = arith.constant 0 : index
      %c0_30 = arith.constant 0 : index
      %28 = vector.load %arg6[%c0_28, %c0_29, %c0_30] : memref<1x8x1xf32, #tpu.memory_space<vmem>>, vector<1x8x1xf32>
      %29 = vector.broadcast %28 : vector<1x8x1xf32> to vector<1x8x32xf32>
      %30 = arith.mulf %27, %29 : vector<1x8x32xf32>
      %c0_31 = arith.constant 0 : index
      %c0_32 = arith.constant 0 : index
      %c0_33 = arith.constant 0 : index
      %31 = vector.load %arg12[%c0_31, %c0_32, %c0_33] : memref<1x8x32xf32, #tpu.memory_space<vmem>>, vector<1x8x32xf32>
      tpu.vector_store %arg12[%c0_31, %c0_32, %c0_33], %30 {strides = array<i32>} : memref<1x8x32xf32, #tpu.memory_space<vmem>>, vector<1x8x32xf32>,
    } else {
    }
    return
  }
  func.func @transform_0(%arg0: i32, %arg1: i32, %arg2: i32) -> (i32, i32, i32) {
    %c0_i32 = arith.constant 0 : i32
    %c0_i32_0 = arith.constant 0 : i32
    return %arg0, %arg1, %c0_i32 : i32, i32, i32
  }
  func.func @transform_1(%arg0: i32, %arg1: i32, %arg2: i32) -> (i32, i32, i32) {
    %c0_i32 = arith.constant 0 : i32
    return %arg0, %arg1, %arg2 : i32, i32, i32
  }
  func.func @transform_2(%arg0: i32, %arg1: i32, %arg2: i32) -> (i32, i32, i32) {
    %c0_i32 = arith.constant 0 : i32
    %c0_i32_0 = arith.constant 0 : i32
    return %arg0, %arg2, %c0_i32 : i32, i32, i32
  }
  func.func @transform_3(%arg0: i32, %arg1: i32, %arg2: i32) -> (i32, i32, i32) {
    %c0_i32 = arith.constant 0 : i32
    %c0_i32_0 = arith.constant 0 : i32
    return %arg0, %arg1, %c0_i32 : i32, i32, i32
  }
  func.func @transform_4(%arg0: i32, %arg1: i32, %arg2: i32) -> i32 {
    %c0_i32 = arith.constant 0 : i32
    %c0_i32_0 = arith.constant 0 : i32
    return %c0_i32 : i32
  }
  func.func @transform_5(%arg0: i32, %arg1: i32, %arg2: i32) -> (i32, i32) {
    %c0_i32 = arith.constant 0 : i32
    %c0_i32_0 = arith.constant 0 : i32
    %c0_i32_1 = arith.constant 0 : i32
    return %c0_i32, %c0_i32_0 : i32, i32
  }
  func.func @transform_6(%arg0: i32, %arg1: i32, %arg2: i32) -> (i32, i32) {
    %c0_i32 = arith.constant 0 : i32
    %c0_i32_0 = arith.constant 0 : i32
    %c0_i32_1 = arith.constant 0 : i32
    return %c0_i32, %c0_i32_0 : i32, i32
  }
  func.func @transform_7(%arg0: i32, %arg1: i32, %arg2: i32) -> (i32, i32) {
    %c0_i32 = arith.constant 0 : i32
    %c0_i32_0 = arith.constant 0 : i32
    %c0_i32_1 = arith.constant 0 : i32
    return %c0_i32, %c0_i32_0 : i32, i32
  }
  func.func @transform_8(%arg0: i32, %arg1: i32, %arg2: i32) -> (i32, i32) {
    %c0_i32 = arith.constant 0 : i32
    %c0_i32_0 = arith.constant 0 : i32
    %c0_i32_1 = arith.constant 0 : i32
    return %c0_i32, %c0_i32_0 : i32, i32
  }
  func.func @transform_9(%arg0: i32, %arg1: i32, %arg2: i32) -> (i32, i32, i32) {
    %c0_i32 = arith.constant 0 : i32
    %c0_i32_0 = arith.constant 0 : i32
    return %arg0, %arg1, %c0_i32 : i32, i32, i32
  }
}

</mosaic_0001>

<bundles_post_ra>
// kernel: tpu_custom_call.1
= control target key start
LH: loop header
LB: loop body
LE: loop exit
PB: predicated region body
PF: predicated region fallthrough
CT: control target
= control target key end

     0   :  { %s1313_s0 = inlined_call_operand.vmem [shape: f32[2,8,32], index: 0, kind: input, shape index: {}]   ;;  %s1314_s1 = inlined_call_operand.vmem [shape: bf16[2,8,8], index: 1, kind: input, shape index: {}]   ;;  %s1315_s2 = inlined_call_operand.vmem [shape: f32[2,8,32], index: 2, kind: input, shape index: {}]   ;;  %s1316_s3 = inlined_call_operand.vmem [shape: f32[2,8,1], index: 3, kind: input, shape index: {}]   ;;  %s1317_s4 = inlined_call_operand.<no memory space> [shape: f32[1], index: 4, kind: input, shape index: {}]   ;;  %s1318_s5 = inlined_call_operand.vmem [shape: f32[32,64], index: 5, kind: input, shape index: {}]   ;;  %s1319_s6 = inlined_call_operand.vmem [shape: f32[1,64], index: 6, kind: input, shape index: {}]   ;;  %s1320_s7 = inlined_call_operand.vmem [shape: f32[64,32], index: 7, kind: input, shape index: {}]   ;;  %s1321_s8 = inlined_call_operand.vmem [shape: f32[1,32], index: 8, kind: input, shape index: {}]   ;;  %s1322_s9 = inlined_call_operand.hbm [shape: f32[2,8,32], index: 9, kind: output, shape index: {}]  }
   0x1   :  { %14 = sst [smem:[#allocation3]] %s1317_s4 }
   0x2   :  { %15 = vsyncpa [#allocation5], 0 }
   0x3   :  { %17 = vsyncpa [#allocation5 + $0x1], 0  ;;  %s1135_s11 = smov 0   ;;  %s1137_s12 = smov 0  }
   0x4   :  { %s1139_s13 = smov 0   ;;  %s1141_s14 = smov 0  }
   0x5   :  { %s1143_s15 = smov 0   ;;  %s1145_s16 = smov 0  }
   0x6 LB: > { %1325 = sst [smem:[#allocation7_spill]] %s1072_s15  ;;  %s871_s4 = sadd.s32 4294967295, %s1076_s16   ;;  %s1076_s16 = sphi %s1145_s16, %s23_s16   ;;  %s1072_s15 = sphi %s1143_s15, %s1330_s15   ;;  %s1068_s14 = sphi %s1141_s14, %s1329_s14   ;;  %s1064_s13 = sphi %s1139_s13, %s1333_s13   ;;  %s1060_s12 = sphi %s1137_s12, %s1332_s12   ;;  %s1056_s11 = sphi %s1135_s11, %s1331_s11  }
   0x7   : > { %s872_s17 = sadd.s32 4294967294, %s1076_s16   ;;  %s42_s18 = sadd.s32 1, %s1072_s15 }
   0x8   : > { %s270_s19 = sadd.s32 1, %s1064_s13  ;;  %p44_p0 = scmp.ge.s32.totalorder %s42_s18, 2 }
   0x9   : > { %p280_p1 = scmp.ne.s32.totalorder %s1064_s13, %s1060_s12  ;;  %p281_p2 = scmp.eq.s32.totalorder %s871_s4, 1 }
   0xa   : > { %p286_p3 = scmp.ne.s32.totalorder %s1060_s12, %s1056_s11  ;;  %s1335_s18 = smov (%p44_p0, %s42_s18), 0 }
   0xb   : > { %1326 = sst [smem:[#allocation8_spill]] %s1335_s18  ;;  %p1175_p4 = por %p281_p2, %p280_p1 }
   0xc   : > { %p287_p5 = scmp.eq.s32.totalorder %s872_s17, 1  ;;  %s265_s21 = ssub.s32 %s1072_s15, %s1335_s18 }
   0xd   : > { %p875_p6 = scmp.ge.s32.totalorder %s1076_s16, 1  ;;  %p268_p7 = scmp.eq.s32.totalorder %s265_s21, 0 }
   0xe   : > { %p1182_p8 = por %p287_p5, %p286_p3  ;;  %p363_p9 = scmp.lt.s32.totalorder %s1076_s16, 3 }
   0xf   : > { %s1188_s23 = scalar_select %p268_p7, %s1064_s13, %s270_s19  }
  0x10   : > { %p364_p10 = pnand %p875_p6, %p363_p9 }
  0x11   : > { %p425_p11 = scmp.lt.s32.totalorder (!%p364_p10), %s1068_s14, 1  ;;  %s460_s24 = sld [smem:[#allocation3]] (!%p364_p10) }
  0x12   : > { %367 = sbr.rel (%p364_p10) target bundleno = 641 (0x281), region = 56  ;;  %s422_s28 = sand.u32 (!%p364_p10), 1, %s1060_s12  }
  0x13   : > { %s735_s21 = scalar_lea.sflag (!%p364_p10), [#allocation5], %s422_s28 }
  0x17   : > { %v1078_v0 = vmov 0.0   ;;  %vm1079_vm0 = vmmov 0   ;;  %s426_s25 = scalar_select %p425_p11, %s1068_s14, 1  ;;  %vm471_vm1 = vcmask 64512   ;;  %vm465_vm2 = vcmask 261120   ;;  %v555_v7 = vld [vmem:[%s1318_s5 + $0x18] sm:$0xff] }
  0x18   : > { %906 = vmatprep.subr.mxu1 %v1078_v0  ;;  %908 = vmatprep.mubr.msk.f32.mxu1 %vm1079_vm0, %v1078_v0  ;;  %s461_s15 = sadd.f32 1.0, %s460_s24  ;;  %v554_v8 = vld [vmem:[%s1318_s5 + $0x10] sm:$0xff]  ;;  %v553_v9 = vld [vmem:[%s1318_s5 + $0x8] sm:$0xff]  ;;  %v552_v10 = vld [vmem:[%s1318_s5] sm:$0xff]  ;;  %v1080_v24 = vmov 0   ;;  %vm652_vm3 = vcmask 523264  }
  0x19   : > { %922 = vmatprep.subr.mxu0 %v1078_v0  ;;  %938 = vmatprep.mubr.msk.f32.mxu0 %vm1079_vm0, %v1078_v0  ;;  %s1198_s26 = sshll.u32 %s426_s25, 3  ;;  %s878_s27 = sshll.u32 %s426_s25, 2  ;;  %v644_v11 = vld [vmem:[%s1320_s7 + $0x38] sm:$0xff]  ;;  %v643_v12 = vld [vmem:[%s1320_s7 + $0x30] sm:$0xff]  ;;  %v642_v13 = vld [vmem:[%s1320_s7 + $0x28] sm:$0xff] }
  0x1a   : > { %s431_s30 = scalar_lea.vmem %s1313_s0, %s1198_s26  ;;  %s441_s17 = scalar_lea.vmem %s1314_s1, %s878_s27  ;;  %v463_v5 = vstv %s461_s15  ;;  %923 = vmatpush3.msra.mxu0 %v644_v11  ;;  %v641_v14 = vld [vmem:[%s1320_s7 + $0x20] sm:$0xff]  ;;  %v640_v15 = vld [vmem:[%s1320_s7 + $0x18] sm:$0xff]  ;;  %v639_v21 = vld [vmem:[%s1320_s7 + $0x10] sm:$0xff]  ;;  %999 = vset.pattern.permute.xlu0 %v1080_v24 }
  0x1b   : > { %s448_s18 = scalar_lea.vmem %s1315_s2, %s1198_s26  ;;  %v462_v1 = vld [vmem:[%s431_s30] sm:$0xff]  ;;  %924 = vmatprep.subr.mxu0 %v1078_v0  ;;  %v638_v22 = vld [vmem:[%s1320_s7 + $0x8] sm:$0xff]  ;;  %s455_s25 = scalar_lea.vmem %s1316_s3, %s1198_s26 }
  0x1c   : > { %v467_v2 = vld [vmem:[%s441_s17] sm:$0xf]  ;;  %v464_v6 = vmul.f32 %v463_v5, %v462_v1  ;;  %925 = vmatpush3.msra.mxu0 %v643_v12  ;;  %s876_s15 = sshll.u32 %s422_s28, 3  ;;  %s887_s26 = sshll.u32 %s1068_s14, 7 }
  0x1d   : > { %v469_v3 = vld [vmem:[%s448_s18] sm:$0xff]  ;;  %v468_v4 = vunpack.c.l.bf16 %v467_v2  ;;  %926 = vmatprep.subr.mxu0 %v1078_v0  ;;  %s424_s30 = scalar_lea.vmem [#allocation4], %s876_s15  ;;  %s747_s19 = scalar_lea.hbm %s1322_s9, %s887_s26 }
  0x1e   : > { %907 = vmatpush3.msra.mxu1 %v469_v3  ;;  %466 = vst.msk [vmem:[#allocation2] sm:$0xff] %vm465_vm2, %v464_v6  ;;  %927 = vmatpush3.msra.mxu0 %v642_v13  ;;  %v637_v23 = vld [vmem:[%s1320_s7] sm:$0xff]  ;;  %s749_s10 = sshll.u32 %s424_s30, 4  ;;  %s1081_s27 = smov [#allocation4]   ;;  %s750_s10 = int_to_ptr.vmem [resolvable:$true] %s749_s10 }
  0x1f   : > { %909 = vmatmul.mubr.msk.f32.vlgmr.msra.gmra.mxu1 %vm471_vm1, %v468_v4  ;;  %911 = vmatprep.subr.mxu1 %v1078_v0  ;;  %v726_v25 = vld [vmem:[%s455_s25] sm:$0xff]  ;;  %s1000_s25 = scalar_lea.vmem %s750_s10, 128  ;;  %s1004_s14 = sshll.u32 %s1081_s27, 4  ;;  %s1005_s14 = int_to_ptr.vmem [resolvable:$false] %s1004_s14 }
  0x20   : > { %919 = vmatprep.mubr.msk.f32.mxu1 %vm1079_vm0, %v1078_v0  ;;  %912 = vmatpush3.msra.mxu1 %v555_v7  ;;  %v882_v26 = vld [vmem:[%s1319_s6] ss:$0 sm:$0xff]  ;;  %p1001_p12 = scmp.ne.s32.totalorder %s750_s10, %s1000_s25  ;;  %s1006_s24 = scalar_lea.vmem %s1005_s14, 256 }
  0x21   : > { %913 = vmatprep.subr.mxu1 %v1078_v0  ;;  %928 = vmatprep.subr.mxu0 %v1078_v0  ;;  %v884_v31 = vld [vmem:[%s1321_s8] ss:$0 sm:$0xff]  ;;  %p1007_p1 = scmp.lt.s32.totalorder %s750_s10, %s1005_s14  ;;  %p1008_p2 = scmp.lt.s32.totalorder %s1006_s24, %s1000_s25 }
  0x22   : > { %914 = vmatpush3.msra.mxu1 %v554_v8  ;;  %929 = vmatpush3.msra.mxu0 %v641_v14  ;;  %p1002_p13 = pnand %p1001_p12, %p1175_p4 }
  0x23   : > { %915 = vmatprep.subr.mxu1 %v1078_v0  ;;  %930 = vmatprep.subr.mxu0 %v1078_v0  ;;  %p1009_p3 = por %p1008_p2, %p1007_p1 }
  0x24   : > { %916 = vmatpush3.msra.mxu1 %v553_v9  ;;  %931 = vmatpush3.msra.mxu0 %v640_v15  ;;  %p1003_p0 = pneg %p1002_p13 }
  0x25   : > { %917 = vmatprep.subr.mxu1 %v1078_v0  ;;  %932 = vmatprep.subr.mxu0 %v1078_v0  ;;  %v470_v16 = vld [vmem:[#allocation2] sm:$0xff] }
  0x26   : > { %918 = vmatpush3.msra.mxu1 %v552_v10  ;;  %933 = vmatpush3.msra.mxu0 %v639_v21  ;;  %p1010_p5 = pnand %p1009_p3, %p1003_p0 }
  0x27   : > { %934 = vmatprep.subr.mxu0 %v1078_v0  ;;  %729 = vperm.xlu0 %999, %v726_v25  }
  0x28   : > { %935 = vmatpush3.msra.mxu0 %v638_v22 }
  0x29   : > { %936 = vmatprep.subr.mxu0 %v1078_v0 }
  0x2a   : > { %937 = vmatpush3.msra.mxu0 %v637_v23 }
  0xa2   : > { %v730_v33 = vpop.permute.xlu0 %729 }
  0xdf   : > { %v541_v17 = vpop.f32.mrf.mxu1 }
  0xe0   : > { %v545_v18 = vadd.f32 %v541_v17, %v470_v16 }
  0xe1   : > { %v910_v19 = vpop.f32.mrf.mxu1 }
  0xe2   : > { %547 = vst.msk [vmem:[#allocation2] sm:$0xff] %vm465_vm2, %v545_v18 }
  0xe9   : > { %v551_v20 = vld [vmem:[#allocation2] sm:$0xff] }
  0xea   : > { %920 = vmatmul.mubr.msk.f32.vlgmr.msra.gmra.mxu1 %vm465_vm2, %v551_v20 }
 0x1aa   : > { %v632_v27 = vpop.f32.mrf.mxu1 }
 0x1ab   : > { %v633_v28 = vadd.f32 %v882_v26, %v632_v27 }
 0x1ac   : > { %v921_v29 = vpop.f32.mrf.mxu1 }
 0x1ad   : > { %v636_v30 = vmax.f32 %v633_v28, 0.0 }
 0x1af   : > { %939 = vmatmul.mubr.msk.f32.vlgmr.msra.gmra.mxu0 %vm652_vm3, %v636_v30 }
 0x26f   : > { %v722_v32 = vpop.f32.mrf.mxu0 }
 0x270   : > { %v723_v34 = vadd.f32 %v884_v31, %v722_v32 }
 0x271   : > { %v940_v35 = vpop.f32.mrf.mxu0 }
 0x272   : > { %v732_v36 = vmul.f32 %v730_v33, %v723_v34 }
 0x274   : > { %733 = vst.msk [vmem:[%s424_s30] sm:$0xff] %vm465_vm2, %v732_v36 }
 0x275   : > { %1013 = shalt.err (!%p1010_p5)
}
 0x276   : > { %s1014_s15 = scalar_lea.hbm %s747_s19, 128  ;;  %s1018_s29 = scalar_lea.hbm %s1322_s9, 256 }
 0x277   : > { %p1015_p6 = scmp.ne.s32.totalorder %s747_s19, %s1014_s15  ;;  %p1019_p10 = scmp.lt.s32.totalorder %s747_s19, %s1322_s9 }
 0x278   : > { %p1020_p11 = scmp.lt.s32.totalorder %s1018_s29, %s1014_s15 }
 0x279   : > { %p1016_p7 = pnand %p1015_p6, %p1175_p4 }
 0x27a   : > { %p1021_p12 = por %p1020_p11, %p1019_p10 }
 0x27b   : > { %p1017_p9 = pneg %p1016_p7 }
 0x27d   : > { %p1022_p13 = pnand %p1021_p12, %p1017_p9 }
 0x27f   : > { %1025 = shalt.err (!%p1022_p13)
}
 0x280   : > { %941 = dma.vmem_to_hbm [thread:$0]  (%p1175_p4), %s750_s10, 128, %s747_s19, %s735_s21  }
 0x281 PF: > { %p947_p0 = scmp.ge.s32.totalorder %s1076_s16, 2  ;;  %s761_s4 = sand.u32 1, %s1056_s11  }
 0x282   : > { %s762_s17 = scalar_lea.sflag [#allocation5], %s761_s4 }
 0x283   : > { %p944_p1 = pnand %p947_p0, %p1182_p8 }
 0x285   : > { %p945_p2 = pneg %p944_p1 }
 0x287   : > { %1051 = dma.done.wait (%p945_p2), %s762_s17, 128  }
 0x288   : > { %1053 = vsyncadd (%p945_p2), %s762_s17, 4294967168  ;;  %s23_s16 = sadd.s32 1, %s1076_s16   ;;  %s1329_s14 = sld [smem:[#allocation7_spill]] }
 0x289   : > { %p20_p3 = scmp.ge.s32.totalorder %s23_s16, 4   ;;  %s1330_s15 = sld [smem:[#allocation8_spill]] }
 0x28a   : > { %s1331_s11 = smov %s1060_s12  ;;  %s1332_s12 = smov %s1064_s13 }
 0x28b   : > { %s1333_s13 = smov %s1188_s23  ;;  %22 = sbr.rel (!%p20_p3) target bundleno = 6 (0x6), region = 108 }
 0x290   :  { %767 = vsyncpa [#allocation5], 1 }
 0x291   :  { %769 = vsyncpa [#allocation5 + $0x1], 1 }

</bundles_post_ra>
